<compile_context>
chip_gen: v5e
topology: v5e:2x2
jax: 0.10.0
libtpu: 0.0.40
codegen_flags: <defaults>
</compile_context>

<pallas_src>
import jax
import jax.numpy as jnp
from jax.experimental import pallas as pl
from jax.experimental.pallas import tpu as pltpu


# ----------------------------- kernels ------------------------------------


def _mixer_kernel(w_ref, b_ref, x_ref, o_ref):
    """Resident-weight path.

    w_ref: (L, L)  pre-masked conv weight (resident across grid steps)
    b_ref: (L, 1)  conv bias (f32), broadcast over the lane axis
    x_ref: (L, TD) column chunk of one batch element
    o_ref: (L, TD) matching output chunk
    """
    y = jnp.dot(w_ref[...], x_ref[...], preferred_element_type=jnp.float32)
    o_ref[...] = (y + b_ref[...]).astype(o_ref.dtype)


def _mixer_kernel_tiled(w_ref, b_ref, x_ref, o_ref, acc_ref):
    """M/K-tiled path (large L): f32 accumulator over the K (seq) axis.

    w_ref: (TM, TK), b_ref: (TM, 1), x_ref: (TK, TD), o_ref: (TM, TD)
    acc_ref: (TM, TD) f32 VMEM scratch
    """
    k = pl.program_id(3)

    @pl.when(k == 0)
    def _():
        acc_ref[...] = jnp.zeros_like(acc_ref)

    acc_ref[...] += jnp.dot(w_ref[...], x_ref[...],
                            preferred_element_type=jnp.float32)

    @pl.when(k == pl.num_programs(3) - 1)
    def _():
        o_ref[...] = (acc_ref[...] + b_ref[...]).astype(o_ref.dtype)


# ----------------------------- wrapper -------------------------------------


def _round_dn(v, q):
    return (v // q) * q


def _vmem_budget_bytes():
    """Safe per-call VMEM budget for the current chip generation."""
    try:
        cap = int(pltpu.get_tpu_info().vmem_capacity_bytes)
    except Exception:
        cap = 64 << 20  # conservative (v7x-sized) fallback
    # ~75% of physical: 48 MiB on v7x (64 MiB), ~96 MiB on v5e/v6e (128 MiB).
    return max(16 << 20, min((cap * 3) // 4, 100 << 20))


def mixer_block_forward(x, conv_weight, conv_bias, *,
                        compute_dtype=None, out_dtype=None,
                        vmem_budget_bytes=None, force_tiled=False,
                        tm=None, tk=None, td=None):
    """Forward of MixerBlock (default flags): out = tril(W) @ x + bias.

    x: (B, L, D); conv_weight: (L, L, 1); conv_bias: (L,).
    compute_dtype: optional operand dtype (e.g. jnp.bfloat16); accumulation
    and bias add stay f32.  out_dtype defaults to x.dtype.
    """
    B, L, D = x.shape
    in_dtype = jnp.dtype(compute_dtype) if compute_dtype is not None else x.dtype
    out_dt = jnp.dtype(out_dtype) if out_dtype is not None else x.dtype
    in_isz = jnp.dtype(in_dtype).itemsize
    out_isz = jnp.dtype(out_dt).itemsize

    # Causal mask applied once outside the kernel; bias kept f32.
    w = jnp.tril(conv_weight[:, :, 0]).astype(in_dtype)   # (L, L)
    b = conv_bias.reshape(L, 1).astype(jnp.float32)       # (L, 1)
    x_in = x.astype(in_dtype)

    budget = int(vmem_budget_bytes) if vmem_budget_bytes is not None else _vmem_budget_bytes()
    headroom = 2 << 20
    bias_bytes = 2 * max(L, 8) * 128 * 4                  # padded + double-buffered

    # ---------- simple path: whole (L, L) weight resident, grid (B, D-tiles) ----------
    w_bytes = 2 * max(L, 8) * max(L, 128) * in_isz        # conservative (double-buffered)
    per_col = 2 * L * in_isz + 2 * L * out_isz            # dbl-buffered x + out, per lane column
    avail = budget - headroom - w_bytes - bias_bytes
    use_simple = (not force_tiled) and (avail >= per_col * min(D, 128))

    if use_simple:
        if td is not None:
            td_eff = int(td)
            td_eff = D if td_eff >= D else td_eff
        else:
            td_target = max(128, (4 << 20) // max(1, L * in_isz))   # ~4 MiB x-blocks
            td_eff = min(int(avail // per_col), td_target)
            td_eff = D if td_eff >= D else max(128, _round_dn(td_eff, 128))

        grid = (B, pl.cdiv(D, td_eff))
        return pl.pallas_call(
            _mixer_kernel,
            out_shape=jax.ShapeDtypeStruct((B, L, D), out_dt),
            grid_spec=pltpu.PrefetchScalarGridSpec(
                num_scalar_prefetch=0,
                grid=grid,
                in_specs=[
                    pl.BlockSpec((L, L), lambda bi, j: (0, 0)),               # resident W
                    pl.BlockSpec((L, 1), lambda bi, j: (0, 0)),               # resident bias
                    pl.BlockSpec((pl.Squeezed(), L, td_eff),
                                 lambda bi, j: (bi, 0, j)),                   # x chunk
                ],
                out_specs=pl.BlockSpec((pl.Squeezed(), L, td_eff),
                                       lambda bi, j: (bi, 0, j)),
            ),
            compiler_params=pltpu.CompilerParams(
                dimension_semantics=("parallel", "parallel"),
                vmem_limit_bytes=budget),
        )(w, b, x_in)

    # ---------- tiled path (large L or forced): M/K tiling, f32 accumulator ----------
    tm_eff = int(tm) if tm is not None else (L if L <= 256 else 256)
    if tk is not None:
        tk_eff = int(tk)
    else:
        tk_eff = L
        for cand in (512, 256, 128):
            if L % cand == 0:
                tk_eff = cand
                break
    # K is the contraction axis: partial K blocks would feed unspecified pad
    # values into the accumulator, so require exact divisibility (fall back
    # to full-extent K otherwise -- always exact).
    if L % tk_eff != 0:
        tk_eff = L

    fixed = 2 * tm_eff * tk_eff * in_isz + bias_bytes + headroom
    per_col_t = 2 * tk_eff * in_isz + 2 * tm_eff * out_isz + tm_eff * 4
    avail_t = budget - fixed
    if td is not None:
        td_eff = int(td)
        td_eff = D if td_eff >= D else td_eff
    else:
        td_eff = int(avail_t // per_col_t) if avail_t > 0 else 128
        td_eff = D if td_eff >= D else max(128, _round_dn(td_eff, 128))

    grid = (B, pl.cdiv(L, tm_eff), pl.cdiv(D, td_eff), L // tk_eff)
    return pl.pallas_call(
        _mixer_kernel_tiled,
        out_shape=jax.ShapeDtypeStruct((B, L, D), out_dt),
        grid_spec=pltpu.PrefetchScalarGridSpec(
            num_scalar_prefetch=0,
            grid=grid,
            in_specs=[
                pl.BlockSpec((tm_eff, tk_eff), lambda bi, i, j, k: (i, k)),
                pl.BlockSpec((tm_eff, 1), lambda bi, i, j, k: (i, 0)),
                pl.BlockSpec((pl.Squeezed(), tk_eff, td_eff),
                             lambda bi, i, j, k: (bi, k, j)),
            ],
            out_specs=pl.BlockSpec((pl.Squeezed(), tm_eff, td_eff),
                                   lambda bi, i, j, k: (bi, i, j)),
            scratch_shapes=[pltpu.VMEM((tm_eff, td_eff), jnp.float32)],
        ),
        compiler_params=pltpu.CompilerParams(
            dimension_semantics=("parallel", "parallel", "parallel", "arbitrary"),
            vmem_limit_bytes=budget),
    )(w, b, x_in)


# ----------------------------- reference & tests ---------------------------


def reference_forward(x, conv_weight, conv_bias):
    """Pure-JAX reference of the PyTorch forward (default flags)."""
    w = jnp.tril(conv_weight[:, :, 0])            # (L, L) causal-masked
    y = jnp.einsum("fd,bdk->bfk", w, x)           # Conv1d with kernel size 1
    return y + conv_bias[None, :, None]


def _run_case(key, B, L, D, atol=1e-5, rtol=1e-5, **kw):
    kx, kw_, kb = jax.random.split(key, 3)
    x = jax.random.normal(kx, (B, L, D), dtype=jnp.float32)
    bound = 1.0 / (L ** 0.5)
    conv_weight = jax.random.uniform(kw_, (L, L, 1), jnp.float32, -bound, bound)
    conv_bias = jax.random.uniform(kb, (L,), jnp.float32, -bound, bound)

    out = mixer_block_forward(x, conv_weight, conv_bias, **kw)
    out = jax.block_until_ready(out)

    ref = reference_forward(x, conv_weight, conv_bias)
    assert out.shape == (B, L, D)
    err = jnp.max(jnp.abs(out.astype(jnp.float32) - ref))
    assert jnp.allclose(out.astype(jnp.float32), ref, atol=atol, rtol=rtol), (
        f"mismatch B={B} L={L} D={D} kw={kw}: max|err|={err}")


if __name__ == "__main__":
    key = jax.random.PRNGKey(0)
    k0, k1, k2, k3 = jax.random.split(key, 4)

    # Module defaults scaled down: batch=2, length(seq)=8, dim=32. One
    # full-extent D block per batch element; 2 "parallel" grid steps.
    _run_case(k0, B=2, L=8, D=32)
    # D tiling with a partial edge block (TD=128 over D=200): validates the
    # masked-writeback path that replaces the old lane-padding scheme.
    _run_case(k1, B=2, L=8, D=200, td=128)
    # Forced M/K-tiled path (large-L fallback) with real K accumulation.
    _run_case(k2, B=2, L=256, D=128, force_tiled=True, tm=128, tk=128, td=128,
              atol=1e-4, rtol=1e-4)
    # bf16 operand path (f32 accumulate), loose tolerance.
    _run_case(k3, B=2, L=8, D=32, compute_dtype=jnp.bfloat16,
              atol=5e-2, rtol=5e-2)

    print("KERNEL_OK")
</pallas_src>

<mosaic_0001>
module attributes {stable_mosaic.version = 11 : i64} {
  func.func @_mixer_kernel(%arg0: i32, %arg1: i32, %arg2: memref<8x8xf32, #tpu.memory_space<vmem>>, %arg3: memref<8x1xf32, #tpu.memory_space<vmem>>, %arg4: memref<1x8x32xf32, #tpu.memory_space<vmem>>, %arg5: memref<1x8x32xf32, #tpu.memory_space<vmem>>) attributes {dimension_semantics = [#tpu.dimension_semantics<parallel>, #tpu.dimension_semantics<parallel>], iteration_bounds = array<i64: 2, 1>, scalar_prefetch = 0 : i64, scratch_operands = 0 : i64, tpu.core_type = #tpu.core_type<tc>, window_params = [{pipeline_mode = #tpu.pipeline_mode<synchronous>, transform_indices = @transform_0, window_bounds = array<i64: 8, 8>}, {pipeline_mode = #tpu.pipeline_mode<synchronous>, transform_indices = @transform_1, window_bounds = array<i64: 8, 1>}, {transform_indices = @transform_2, window_bounds = array<i64: 1, 8, 32>}, {transform_indices = @transform_3, window_bounds = array<i64: 1, 8, 32>}]} {
    %c0 = arith.constant 0 : index
    %c0_0 = arith.constant 0 : index
    %0 = vector.load %arg2[%c0, %c0_0] : memref<8x8xf32, #tpu.memory_space<vmem>>, vector<8x8xf32>
    %c0_1 = arith.constant 0 : index
    %c0_2 = arith.constant 0 : index
    %c0_3 = arith.constant 0 : index
    %1 = vector.load %arg4[%c0_1, %c0_2, %c0_3] : memref<1x8x32xf32, #tpu.memory_space<vmem>>, vector<1x8x32xf32>
    %2 = vector.shape_cast %1 : vector<1x8x32xf32> to vector<8x32xf32>
    %cst = arith.constant dense<0.000000e+00> : vector<8x32xf32>
    %3 = tpu.matmul %0, %2, %cst {dimension_numbers = #tpu.dot_dimension_numbers<[1], [0], [0], [1], [0, 0, 1, 1], [], []>} : vector<8x8xf32>, vector<8x32xf32>, vector<8x32xf32> -> vector<8x32xf32>
    %c0_4 = arith.constant 0 : index
    %c0_5 = arith.constant 0 : index
    %4 = vector.load %arg3[%c0_4, %c0_5] : memref<8x1xf32, #tpu.memory_space<vmem>>, vector<8x1xf32>
    %5 = vector.broadcast %4 : vector<8x1xf32> to vector<8x32xf32>
    %6 = arith.addf %3, %5 : vector<8x32xf32>
    %c0_6 = arith.constant 0 : index
    %c0_7 = arith.constant 0 : index
    %c0_8 = arith.constant 0 : index
    %7 = vector.load %arg5[%c0_6, %c0_7, %c0_8] : memref<1x8x32xf32, #tpu.memory_space<vmem>>, vector<1x8x32xf32>
    %8 = vector.shape_cast %7 : vector<1x8x32xf32> to vector<8x32xf32>
    %9 = vector.shape_cast %6 : vector<8x32xf32> to vector<1x8x32xf32>
    tpu.vector_store %arg5[%c0_6, %c0_7, %c0_8], %9 {strides = array<i32>} : memref<1x8x32xf32, #tpu.memory_space<vmem>>, vector<1x8x32xf32>,
    return
  }
  func.func @transform_0(%arg0: i32, %arg1: i32) -> (i32, i32) {
    %c0_i32 = arith.constant 0 : i32
    %c0_i32_0 = arith.constant 0 : i32
    %c0_i32_1 = arith.constant 0 : i32
    return %c0_i32, %c0_i32_0 : i32, i32
  }
  func.func @transform_1(%arg0: i32, %arg1: i32) -> (i32, i32) {
    %c0_i32 = arith.constant 0 : i32
    %c0_i32_0 = arith.constant 0 : i32
    %c0_i32_1 = arith.constant 0 : i32
    return %c0_i32, %c0_i32_0 : i32, i32
  }
  func.func @transform_2(%arg0: i32, %arg1: i32) -> (i32, i32, i32) {
    %c0_i32 = arith.constant 0 : i32
    %c0_i32_0 = arith.constant 0 : i32
    return %arg0, %c0_i32, %arg1 : i32, i32, i32
  }
  func.func @transform_3(%arg0: i32, %arg1: i32) -> (i32, i32, i32) {
    %c0_i32 = arith.constant 0 : i32
    %c0_i32_0 = arith.constant 0 : i32
    return %arg0, %c0_i32, %arg1 : i32, i32, i32
  }
}

</mosaic_0001>

<bundles_post_ra>
// kernel: tpu_custom_call.1
= control target key start
LH: loop header
LB: loop body
LE: loop exit
PB: predicated region body
PF: predicated region fallthrough
CT: control target
= control target key end

     0   :  { %8 = vsyncpa [#allocation3], 0  ;;  %s675_s0 = inlined_call_operand.vmem [shape: f32[8,8], index: 0, kind: input, shape index: {}]   ;;  %s676_s1 = inlined_call_operand.vmem [shape: f32[8,1], index: 1, kind: input, shape index: {}]   ;;  %s677_s2 = inlined_call_operand.hbm [shape: f32[2,8,32], index: 2, kind: input, shape index: {}]   ;;  %s678_s3 = inlined_call_operand.hbm [shape: f32[2,8,32], index: 3, kind: output, shape index: {}]  }
   0x1   :  { %10 = vsyncpa [#allocation3 + $0x1], 0 }
   0x2   :  { %11 = vsyncpa [#allocation4], 0 }
   0x3   :  { %13 = vsyncpa [#allocation4 + $0x1], 0  ;;  %s549_s12 = smov 0   ;;  %s551_s13 = smov 0  }
   0x4   :  { %s553_s14 = smov 0   ;;  %s555_s15 = smov 0  }
   0x5   :  { %s557_s16 = smov 0   ;;  %s559_s17 = smov 0  }
   0x6 LB: > { %s336_s18 = sadd.s32 4294967295, %s526_s17   ;;  %s337_s19 = sadd.s32 4294967294, %s526_s17   ;;  %s526_s17 = sphi %s559_s17, %s19_s17   ;;  %s522_s16 = sphi %s557_s16, %s687_s16   ;;  %s518_s15 = sphi %s555_s15, %s686_s15   ;;  %s514_s14 = sphi %s553_s14, %s685_s14   ;;  %s510_s13 = sphi %s551_s13, %s684_s13   ;;  %s506_s12 = sphi %s549_s12, %s683_s12  }
   0x7   : > { %s31_s20 = sadd.s32 1, %s522_s16  ;;  %s82_s21 = sadd.s32 1, %s514_s14 }
   0x8   : > { %p33_p0 = scmp.ge.s32.totalorder %s31_s20, 2  ;;  %p89_p1 = scmp.ne.s32.totalorder %s514_s14, %s510_s13 }
   0x9   : > { %p90_p2 = scmp.eq.s32.totalorder %s526_s17, 0  ;;  %p95_p3 = scmp.ne.s32.totalorder %s510_s13, %s506_s12 }
   0xa   : > { %s689_s20 = smov (%p33_p0, %s31_s20), 0  ;;  %p96_p5 = scmp.eq.s32.totalorder %s336_s18, 0 }
   0xb   : > { %p590_p4 = por %p90_p2, %p89_p1  ;;  %s77_s23 = ssub.s32 %s522_s16, %s689_s20 }
   0xc   : > { %p121_p6 = scmp.eq.s32.totalorder %s336_s18, 1  ;;  %p80_p7 = scmp.eq.s32.totalorder %s77_s23, 0 }
   0xd   : > { %p596_p8 = por %p96_p5, %p95_p3  ;;  %p127_p10 = scmp.eq.s32.totalorder %s337_s19, 1 }
   0xe   : > { %p600_p9 = por %p121_p6, %p89_p1  ;;  %p339_p12 = scmp.ge.s32.totalorder %s526_s17, 2 }
   0xf   : > { %s605_s26 = scalar_select %p80_p7, %s514_s14, %s82_s21  }
  0x10   : > { %p607_p11 = por %p127_p10, %p95_p3  ;;  %p362_p13 = scmp.lt.s32.totalorder %s526_s17, 2 }
  0x11   : > { %s153_s28 = sand.u32 1, %s514_s14   ;;  %s341_s30 = sshll.u32 %s522_s16, 3 }
  0x12   : > { %s340_s29 = sshll.u32 %s153_s28, 3  ;;  %s162_s6 = scalar_lea.hbm %s677_s2, %s341_s30 }
  0x13   : > { %s157_s7 = scalar_lea.vmem [#allocation2], %s340_s29  ;;  %s164_s9 = sshll.u32 %s162_s6, 4  ;;  %s165_s9 = int_to_ptr.hbm [resolvable:$true] %s164_s9 }
  0x14   : > { %s166_s8 = sshll.u32 %s157_s7, 4  ;;  %p355_p0 = pnand %p362_p13, %p590_p4  ;;  %s167_s8 = int_to_ptr.vmem [resolvable:$true] %s166_s8 }
  0x15   : > { %p342_p1 = scmp.ge.s32.totalorder %s526_s17, 1  ;;  %p171_p2 = scmp.lt.s32.totalorder %s526_s17, 3 }
  0x16   : > { %s154_s10 = scalar_lea.sflag [#allocation3], %s153_s28 }
  0x17   : > { %357 = dma.hbm_to_vmem [thread:$0]  (!%p355_p0), %s165_s9, 128, %s167_s8, %s154_s10  }
  0x18   : > { %p172_p3 = pnand %p342_p1, %p171_p2 }
  0x19   : > { %s623_s11 = sand.u32 (!%p172_p3), 1, %s510_s13  }
  0x1a   : > { %175 = sbr.rel (%p172_p3) target bundleno = 165 (0xa5), region = 32  ;;  %s343_s18 = sshll.u32 (!%p172_p3), %s623_s11, 3 }
  0x1b   : > { %s178_s19 = scalar_lea.sflag (!%p172_p3), [#allocation3], %s623_s11  ;;  %s181_s21 = scalar_lea.vmem (!%p172_p3), [#allocation2], %s343_s18 }
  0x1f   : > { %497 = dma.done.wait (%p596_p8), %s178_s19, 128  }
  0x20   : > { %499 = vsyncadd (%p596_p8), %s178_s19, 4294967168  ;;  %v528_v0 = vmov 0   ;;  %vm213_vm0 = vcmask 64512   ;;  %v206_v1 = vld [vmem:[%s181_s21] sm:$0xff]  ;;  %s347_s30 = sshll.u32 %s518_s15, 3  ;;  %s204_s6 = scalar_lea.vmem [#allocation5], %s343_s18 }
  0x21   : > { %413 = vset.pattern.permute.xlu0 %v528_v0  ;;  %v205_v2 = vld [vmem:[%s675_s0] sm:$0xff]  ;;  %232 = vmatpush.msra.mxu0 %v206_v1  ;;  %s251_s5 = scalar_lea.hbm %s678_s3, %s347_s30  ;;  %s253_s7 = sshll.u32 %s204_s6, 4  ;;  %vm237_vm1 = vcmask 261120   ;;  %s254_s7 = int_to_ptr.vmem [resolvable:$true] %s253_s7 }
  0x22   : > { %v207_v3 = vld [vmem:[%s676_s1] sm:$0xff]  ;;  %345 = vmatmul.msk.f32.vlgmr.msra.gmra.mxu0 %vm213_vm0, %v205_v2  ;;  %s255_s8 = sshll.u32 %s251_s5, 4  ;;  %s240_s9 = scalar_lea.sflag [#allocation4], %s623_s11  ;;  %s256_s8 = int_to_ptr.hbm [resolvable:$true] %s255_s8 }
  0x23   : > { %210 = vperm.xlu0 %413, %v207_v3   ;;  %s458_s10 = sshra.s32 %s256_s8, 4  ;;  %s464_s18 = scalar_lea.hbm %s678_s3, 16  ;;  %s459_s10 = int_to_ptr.hbm [resolvable:$true] %s458_s10 }
  0x24   : > { %s460_s19 = scalar_lea.hbm %s459_s10, 8  ;;  %p465_p7 = scmp.lt.s32.totalorder %s459_s10, %s678_s3 }
  0x25   : > { %p461_p4 = scmp.ne.s32.totalorder %s459_s10, %s460_s19  ;;  %p466_p8 = scmp.lt.s32.totalorder %s464_s18, %s460_s19 }
  0x27   : > { %p462_p5 = pnand %p461_p4, %p600_p9  ;;  %p467_p10 = por %p466_p8, %p465_p7 }
  0x29   : > { %p463_p6 = pneg %p462_p5 }
  0x2b   : > { %p468_p13 = pnand %p467_p10, %p463_p6 }
  0x95   : > { %v211_v4 = vpop.permute.xlu0 %210 }
  0x9f   : > { %v234_v5 = vpop.f32.mrf.mxu0 }
  0xa0   : > { %v235_v6 = vadd.f32 %v234_v5, %v211_v4 }
  0xa2   : > { %238 = vst.msk [vmem:[%s204_s6] sm:$0xff] %vm237_vm1, %v235_v6 }
  0xa3   : > { %471 = shalt.err (!%p468_p13)
}
  0xa4   : > { %352 = dma.vmem_to_hbm [thread:$0]  (%p600_p9), %s254_s7, 128, %s256_s8, %s240_s9  }
  0xa5 PF: > { %s267_s11 = sand.u32 1, %s506_s12   ;;  %p359_p0 = pnand %p339_p12, %p607_p11 }
  0xa6   : > { %s268_s28 = scalar_lea.sflag [#allocation4], %s267_s11 }
  0xa7   : > { %p360_p1 = pneg %p359_p0 }
  0xa9   : > { %501 = dma.done.wait (%p360_p1), %s268_s28, 128  }
  0xaa   : > { %503 = vsyncadd (%p360_p1), %s268_s28, 4294967168  ;;  %s19_s17 = sadd.s32 1, %s526_s17   ;;  %s683_s12 = smov %s510_s13 }
  0xab   : > { %p16_p2 = scmp.ge.s32.totalorder %s19_s17, 4   ;;  %s684_s13 = smov %s514_s14 }
  0xac   : > { %s685_s14 = smov %s605_s26  ;;  %s686_s15 = smov %s522_s16 }
  0xad   : > { %s687_s16 = smov %s689_s20  ;;  %18 = sbr.rel (!%p16_p2) target bundleno = 6 (0x6), region = 77 }
  0xb2   :  { %274 = vsyncpa [#allocation3], 1 }
  0xb3   :  { %276 = vsyncpa [#allocation3 + $0x1], 1 }
  0xb4   :  { %277 = vsyncpa [#allocation4], 1 }
  0xb5   :  { %279 = vsyncpa [#allocation4 + $0x1], 1 }

</bundles_post_ra>
